<compile_context>
chip_gen: v7x
topology: tpu7x:2x2x1
jax: 0.10.0
libtpu: 0.0.40
codegen_flags: <defaults>
</compile_context>

<pallas_src>
import math

import jax
import jax.numpy as jnp
from jax.experimental import pallas as pl
from jax.experimental.pallas import tpu as pltpu


def _level_params(h, w, level):
    """Static per-level pooling geometry (mirrors the torch module exactly)."""
    ksz = (math.ceil(h / level), math.ceil(w / level))
    pad = (math.floor((ksz[0] * level - h + 1) / 2),
           math.floor((ksz[1] * level - w + 1) / 2))
    h_new = h + 2 * pad[0]
    w_new = w + 2 * pad[1]
    ksz = (math.ceil(h_new / level), math.ceil(w_new / level))
    strd = (math.floor(h_new / level), math.floor(w_new / level))
    out_h = (h_new - ksz[0]) // strd[0] + 1
    out_w = (w_new - ksz[1]) // strd[1] + 1
    return ksz, strd, pad, out_h, out_w


def _make_spp_kernel(h, w, level_params, pool_type):
    """Fused kernel: (H, W, TILE_NC) tile -> (TOTAL_BINS, TILE_NC) pooled slab."""
    is_max = (pool_type == "max_pool")

    def kernel(x_ref, o_ref):
        tile_nc = o_ref.shape[1]
        bin_base = 0
        for (k_h, k_w), (s_h, s_w), (p_h, p_w), out_h, out_w in level_params:
            inv_area = 1.0 / float(k_h * k_w)
            for oh in range(out_h):
                r0 = oh * s_h - p_h
                r1 = r0 + k_h
                rr0, rr1 = max(r0, 0), min(r1, h)
                rows_touch_pad = (r0 < 0) or (r1 > h)
                row_acc = None
                if rr1 > rr0:
                    # Combine the window's rows elementwise -> (W, TILE_NC);
                    # each loaded row is reused by every bin of this output row.
                    row_acc = x_ref[rr0]
                    for r in range(rr0 + 1, rr1):
                        nxt = x_ref[r]
                        row_acc = jnp.maximum(row_acc, nxt) if is_max else row_acc + nxt
                for ow in range(out_w):
                    bin_idx = bin_base + oh * out_w + ow
                    c0 = ow * s_w - p_w
                    c1 = c0 + k_w
                    cc0, cc1 = max(c0, 0), min(c1, w)
                    touches_pad = rows_touch_pad or (c0 < 0) or (c1 > w)
                    if row_acc is None or cc1 <= cc0:
                        # Window lies entirely inside the zero padding.
                        o_ref[bin_idx, :] = jnp.zeros((tile_nc,), o_ref.dtype)
                        continue
                    v = row_acc[cc0]
                    for ci in range(cc0 + 1, cc1):
                        v = jnp.maximum(v, row_acc[ci]) if is_max else v + row_acc[ci]
                    if is_max:
                        if touches_pad:
                            # Explicit zero padding participates in the max
                            # (same semantics as ZeroPad2d + max_pool2d).
                            v = jnp.maximum(v, 0.0)
                    else:
                        # Zeros from padding count toward the k_h*k_w denominator.
                        v = v * inv_area
                    o_ref[bin_idx, :] = v.astype(o_ref.dtype)
            bin_base += out_h * out_w

    return kernel


def _pick_tile_nc(nc, h, w):
    """Largest multiple of 128 whose double-buffered f32 input tile stays ~4 MiB."""
    budget = 4 * 1024 * 1024
    per_lane = h * w * 4 * 2          # f32, double-buffered input
    max_tile = max(128, (budget // per_lane) // 128 * 128)
    max_tile = min(max_tile, 2048)
    nc_rounded = ((nc + 127) // 128) * 128
    return min(max_tile, nc_rounded)


def spp_layer(x, num_levels, pool_type="max_pool"):
    """x: (N, C, H, W) float32 -> (N, sum_levels C*out_h*out_w), torch-ordered."""
    n, c, h, w = x.shape
    nc = n * c
    params = [_level_params(h, w, i + 1) for i in range(num_levels)]
    bins = [p[3] * p[4] for p in params]
    total_bins = sum(bins)

    tile_nc = _pick_tile_nc(nc, h, w)
    nc_padded = ((nc + tile_nc - 1) // tile_nc) * tile_nc

    # Put N*C on the lane (last) axis: (H, W, N*C), zero-padded along NC.
    x_hwnc = jnp.transpose(x, (2, 3, 0, 1)).reshape(h, w, nc)
    if nc_padded != nc:
        x_hwnc = jnp.pad(x_hwnc, ((0, 0), (0, 0), (0, nc_padded - nc)))

    kernel = _make_spp_kernel(h, w, params, pool_type)
    out = pl.pallas_call(
        kernel,
        grid=(nc_padded // tile_nc,),
        in_specs=[pl.BlockSpec((h, w, tile_nc), lambda i: (0, 0, i))],
        out_specs=pl.BlockSpec((total_bins, tile_nc), lambda i: (0, i)),
        out_shape=jax.ShapeDtypeStruct((total_bins, nc_padded), x.dtype),
        compiler_params=pltpu.CompilerParams(
            dimension_semantics=("parallel",),
            vmem_limit_bytes=32 * 1024 * 1024,
        ),
    )(x_hwnc)

    # (total_bins, NC_pad) -> torch `view(num, -1)` + `cat(dim=-1)` ordering.
    out = out[:, :nc]                 # drop the NC padding lanes first
    pieces, off = [], 0
    for b in bins:
        lvl = out[off:off + b]                                  # (b, N*C)
        pieces.append(jnp.transpose(lvl, (1, 0)).reshape(n, c * b))  # (N, C*b)
        off += b
    return jnp.concatenate(pieces, axis=-1)


def _spp_reference(x, num_levels, pool_type="max_pool"):
    """Pure-JAX reference (no Pallas) mirroring the torch module."""
    n, c, h, w = x.shape
    outs = []
    for i in range(num_levels):
        (k_h, k_w), (s_h, s_w), (p_h, p_w), out_h, out_w = _level_params(h, w, i + 1)
        xp = jnp.pad(x, ((0, 0), (0, 0), (p_h, p_h), (p_w, p_w)))
        rows = []
        for oh in range(out_h):
            cols = []
            for ow in range(out_w):
                win = xp[:, :, oh * s_h: oh * s_h + k_h, ow * s_w: ow * s_w + k_w]
                if pool_type == "max_pool":
                    cols.append(jnp.max(win, axis=(2, 3)))
                else:
                    cols.append(jnp.mean(win, axis=(2, 3)))
            rows.append(jnp.stack(cols, axis=-1))
        pooled = jnp.stack(rows, axis=-2)       # (N, C, out_h, out_w)
        outs.append(pooled.reshape(n, -1))
    return jnp.concatenate(outs, axis=-1)


if __name__ == "__main__":
    key = jax.random.PRNGKey(0)
    x = jax.random.normal(key, (2, 4, 16, 16), dtype=jnp.float32)
    num_levels = 3

    for pool_type in ("max_pool", "avg_pool"):
        out = jax.block_until_ready(spp_layer(x, num_levels, pool_type))
        ref = _spp_reference(x, num_levels, pool_type)
        assert out.shape == ref.shape, (pool_type, out.shape, ref.shape)
        assert jnp.allclose(out, ref, atol=1e-5, rtol=1e-5), f"mismatch vs reference: {pool_type}"

    print("KERNEL_OK")
</pallas_src>

<mosaic_0001>
module attributes {stable_mosaic.version = 11 : i64} {
  func.func @kernel(%arg0: i32, %arg1: memref<16x16x128xf32, #tpu.memory_space<vmem>>, %arg2: memref<14x128xf32, #tpu.memory_space<vmem>>) attributes {dimension_semantics = [#tpu.dimension_semantics<parallel>], iteration_bounds = array<i64: 1>, scalar_prefetch = 0 : i64, scratch_operands = 0 : i64, tpu.core_type = #tpu.core_type<tc>, window_params = [{transform_indices = @transform_0, window_bounds = array<i64: 16, 16, 128>}, {transform_indices = @transform_1, window_bounds = array<i64: 14, 128>}]} {
    %c0 = arith.constant 0 : index
    %c0_0 = arith.constant 0 : index
    %c0_1 = arith.constant 0 : index
    %0 = vector.load %arg1[%c0, %c0_0, %c0_1] : memref<16x16x128xf32, #tpu.memory_space<vmem>>, vector<1x16x128xf32>
    %1 = vector.shape_cast %0 : vector<1x16x128xf32> to vector<16x128xf32>
    %c1 = arith.constant 1 : index
    %c0_2 = arith.constant 0 : index
    %c0_3 = arith.constant 0 : index
    %2 = vector.load %arg1[%c1, %c0_2, %c0_3] : memref<16x16x128xf32, #tpu.memory_space<vmem>>, vector<1x16x128xf32>
    %3 = vector.shape_cast %2 : vector<1x16x128xf32> to vector<16x128xf32>
    %4 = arith.maximumf %1, %3 : vector<16x128xf32>
    %c2 = arith.constant 2 : index
    %c0_4 = arith.constant 0 : index
    %c0_5 = arith.constant 0 : index
    %5 = vector.load %arg1[%c2, %c0_4, %c0_5] : memref<16x16x128xf32, #tpu.memory_space<vmem>>, vector<1x16x128xf32>
    %6 = vector.shape_cast %5 : vector<1x16x128xf32> to vector<16x128xf32>
    %7 = arith.maximumf %4, %6 : vector<16x128xf32>
    %c3 = arith.constant 3 : index
    %c0_6 = arith.constant 0 : index
    %c0_7 = arith.constant 0 : index
    %8 = vector.load %arg1[%c3, %c0_6, %c0_7] : memref<16x16x128xf32, #tpu.memory_space<vmem>>, vector<1x16x128xf32>
    %9 = vector.shape_cast %8 : vector<1x16x128xf32> to vector<16x128xf32>
    %10 = arith.maximumf %7, %9 : vector<16x128xf32>
    %c4 = arith.constant 4 : index
    %c0_8 = arith.constant 0 : index
    %c0_9 = arith.constant 0 : index
    %11 = vector.load %arg1[%c4, %c0_8, %c0_9] : memref<16x16x128xf32, #tpu.memory_space<vmem>>, vector<1x16x128xf32>
    %12 = vector.shape_cast %11 : vector<1x16x128xf32> to vector<16x128xf32>
    %13 = arith.maximumf %10, %12 : vector<16x128xf32>
    %c5 = arith.constant 5 : index
    %c0_10 = arith.constant 0 : index
    %c0_11 = arith.constant 0 : index
    %14 = vector.load %arg1[%c5, %c0_10, %c0_11] : memref<16x16x128xf32, #tpu.memory_space<vmem>>, vector<1x16x128xf32>
    %15 = vector.shape_cast %14 : vector<1x16x128xf32> to vector<16x128xf32>
    %16 = arith.maximumf %13, %15 : vector<16x128xf32>
    %c6 = arith.constant 6 : index
    %c0_12 = arith.constant 0 : index
    %c0_13 = arith.constant 0 : index
    %17 = vector.load %arg1[%c6, %c0_12, %c0_13] : memref<16x16x128xf32, #tpu.memory_space<vmem>>, vector<1x16x128xf32>
    %18 = vector.shape_cast %17 : vector<1x16x128xf32> to vector<16x128xf32>
    %19 = arith.maximumf %16, %18 : vector<16x128xf32>
    %c7 = arith.constant 7 : index
    %c0_14 = arith.constant 0 : index
    %c0_15 = arith.constant 0 : index
    %20 = vector.load %arg1[%c7, %c0_14, %c0_15] : memref<16x16x128xf32, #tpu.memory_space<vmem>>, vector<1x16x128xf32>
    %21 = vector.shape_cast %20 : vector<1x16x128xf32> to vector<16x128xf32>
    %22 = arith.maximumf %19, %21 : vector<16x128xf32>
    %c8 = arith.constant 8 : index
    %c0_16 = arith.constant 0 : index
    %c0_17 = arith.constant 0 : index
    %23 = vector.load %arg1[%c8, %c0_16, %c0_17] : memref<16x16x128xf32, #tpu.memory_space<vmem>>, vector<1x16x128xf32>
    %24 = vector.shape_cast %23 : vector<1x16x128xf32> to vector<16x128xf32>
    %25 = arith.maximumf %22, %24 : vector<16x128xf32>
    %c9 = arith.constant 9 : index
    %c0_18 = arith.constant 0 : index
    %c0_19 = arith.constant 0 : index
    %26 = vector.load %arg1[%c9, %c0_18, %c0_19] : memref<16x16x128xf32, #tpu.memory_space<vmem>>, vector<1x16x128xf32>
    %27 = vector.shape_cast %26 : vector<1x16x128xf32> to vector<16x128xf32>
    %28 = arith.maximumf %25, %27 : vector<16x128xf32>
    %c10 = arith.constant 10 : index
    %c0_20 = arith.constant 0 : index
    %c0_21 = arith.constant 0 : index
    %29 = vector.load %arg1[%c10, %c0_20, %c0_21] : memref<16x16x128xf32, #tpu.memory_space<vmem>>, vector<1x16x128xf32>
    %30 = vector.shape_cast %29 : vector<1x16x128xf32> to vector<16x128xf32>
    %31 = arith.maximumf %28, %30 : vector<16x128xf32>
    %c11 = arith.constant 11 : index
    %c0_22 = arith.constant 0 : index
    %c0_23 = arith.constant 0 : index
    %32 = vector.load %arg1[%c11, %c0_22, %c0_23] : memref<16x16x128xf32, #tpu.memory_space<vmem>>, vector<1x16x128xf32>
    %33 = vector.shape_cast %32 : vector<1x16x128xf32> to vector<16x128xf32>
    %34 = arith.maximumf %31, %33 : vector<16x128xf32>
    %c12 = arith.constant 12 : index
    %c0_24 = arith.constant 0 : index
    %c0_25 = arith.constant 0 : index
    %35 = vector.load %arg1[%c12, %c0_24, %c0_25] : memref<16x16x128xf32, #tpu.memory_space<vmem>>, vector<1x16x128xf32>
    %36 = vector.shape_cast %35 : vector<1x16x128xf32> to vector<16x128xf32>
    %37 = arith.maximumf %34, %36 : vector<16x128xf32>
    %c13 = arith.constant 13 : index
    %c0_26 = arith.constant 0 : index
    %c0_27 = arith.constant 0 : index
    %38 = vector.load %arg1[%c13, %c0_26, %c0_27] : memref<16x16x128xf32, #tpu.memory_space<vmem>>, vector<1x16x128xf32>
    %39 = vector.shape_cast %38 : vector<1x16x128xf32> to vector<16x128xf32>
    %40 = arith.maximumf %37, %39 : vector<16x128xf32>
    %c14 = arith.constant 14 : index
    %c0_28 = arith.constant 0 : index
    %c0_29 = arith.constant 0 : index
    %41 = vector.load %arg1[%c14, %c0_28, %c0_29] : memref<16x16x128xf32, #tpu.memory_space<vmem>>, vector<1x16x128xf32>
    %42 = vector.shape_cast %41 : vector<1x16x128xf32> to vector<16x128xf32>
    %43 = arith.maximumf %40, %42 : vector<16x128xf32>
    %c15 = arith.constant 15 : index
    %c0_30 = arith.constant 0 : index
    %c0_31 = arith.constant 0 : index
    %44 = vector.load %arg1[%c15, %c0_30, %c0_31] : memref<16x16x128xf32, #tpu.memory_space<vmem>>, vector<1x16x128xf32>
    %45 = vector.shape_cast %44 : vector<1x16x128xf32> to vector<16x128xf32>
    %46 = arith.maximumf %43, %45 : vector<16x128xf32>
    %47 = vector.extract_strided_slice %46 {offsets = [0, 0], sizes = [1, 128], strides = [1, 1]} : vector<16x128xf32> to vector<1x128xf32>
    %48 = vector.shape_cast %47 : vector<1x128xf32> to vector<128xf32>
    %49 = vector.extract_strided_slice %46 {offsets = [1, 0], sizes = [1, 128], strides = [1, 1]} : vector<16x128xf32> to vector<1x128xf32>
    %50 = vector.shape_cast %49 : vector<1x128xf32> to vector<128xf32>
    %51 = arith.maximumf %48, %50 : vector<128xf32>
    %52 = vector.extract_strided_slice %46 {offsets = [2, 0], sizes = [1, 128], strides = [1, 1]} : vector<16x128xf32> to vector<1x128xf32>
    %53 = vector.shape_cast %52 : vector<1x128xf32> to vector<128xf32>
    %54 = arith.maximumf %51, %53 : vector<128xf32>
    %55 = vector.extract_strided_slice %46 {offsets = [3, 0], sizes = [1, 128], strides = [1, 1]} : vector<16x128xf32> to vector<1x128xf32>
    %56 = vector.shape_cast %55 : vector<1x128xf32> to vector<128xf32>
    %57 = arith.maximumf %54, %56 : vector<128xf32>
    %58 = vector.extract_strided_slice %46 {offsets = [4, 0], sizes = [1, 128], strides = [1, 1]} : vector<16x128xf32> to vector<1x128xf32>
    %59 = vector.shape_cast %58 : vector<1x128xf32> to vector<128xf32>
    %60 = arith.maximumf %57, %59 : vector<128xf32>
    %61 = vector.extract_strided_slice %46 {offsets = [5, 0], sizes = [1, 128], strides = [1, 1]} : vector<16x128xf32> to vector<1x128xf32>
    %62 = vector.shape_cast %61 : vector<1x128xf32> to vector<128xf32>
    %63 = arith.maximumf %60, %62 : vector<128xf32>
    %64 = vector.extract_strided_slice %46 {offsets = [6, 0], sizes = [1, 128], strides = [1, 1]} : vector<16x128xf32> to vector<1x128xf32>
    %65 = vector.shape_cast %64 : vector<1x128xf32> to vector<128xf32>
    %66 = arith.maximumf %63, %65 : vector<128xf32>
    %67 = vector.extract_strided_slice %46 {offsets = [7, 0], sizes = [1, 128], strides = [1, 1]} : vector<16x128xf32> to vector<1x128xf32>
    %68 = vector.shape_cast %67 : vector<1x128xf32> to vector<128xf32>
    %69 = arith.maximumf %66, %68 : vector<128xf32>
    %70 = vector.extract_strided_slice %46 {offsets = [8, 0], sizes = [1, 128], strides = [1, 1]} : vector<16x128xf32> to vector<1x128xf32>
    %71 = vector.shape_cast %70 : vector<1x128xf32> to vector<128xf32>
    %72 = arith.maximumf %69, %71 : vector<128xf32>
    %73 = vector.extract_strided_slice %46 {offsets = [9, 0], sizes = [1, 128], strides = [1, 1]} : vector<16x128xf32> to vector<1x128xf32>
    %74 = vector.shape_cast %73 : vector<1x128xf32> to vector<128xf32>
    %75 = arith.maximumf %72, %74 : vector<128xf32>
    %76 = vector.extract_strided_slice %46 {offsets = [10, 0], sizes = [1, 128], strides = [1, 1]} : vector<16x128xf32> to vector<1x128xf32>
    %77 = vector.shape_cast %76 : vector<1x128xf32> to vector<128xf32>
    %78 = arith.maximumf %75, %77 : vector<128xf32>
    %79 = vector.extract_strided_slice %46 {offsets = [11, 0], sizes = [1, 128], strides = [1, 1]} : vector<16x128xf32> to vector<1x128xf32>
    %80 = vector.shape_cast %79 : vector<1x128xf32> to vector<128xf32>
    %81 = arith.maximumf %78, %80 : vector<128xf32>
    %82 = vector.extract_strided_slice %46 {offsets = [12, 0], sizes = [1, 128], strides = [1, 1]} : vector<16x128xf32> to vector<1x128xf32>
    %83 = vector.shape_cast %82 : vector<1x128xf32> to vector<128xf32>
    %84 = arith.maximumf %81, %83 : vector<128xf32>
    %85 = vector.extract_strided_slice %46 {offsets = [13, 0], sizes = [1, 128], strides = [1, 1]} : vector<16x128xf32> to vector<1x128xf32>
    %86 = vector.shape_cast %85 : vector<1x128xf32> to vector<128xf32>
    %87 = arith.maximumf %84, %86 : vector<128xf32>
    %88 = vector.extract_strided_slice %46 {offsets = [14, 0], sizes = [1, 128], strides = [1, 1]} : vector<16x128xf32> to vector<1x128xf32>
    %89 = vector.shape_cast %88 : vector<1x128xf32> to vector<128xf32>
    %90 = arith.maximumf %87, %89 : vector<128xf32>
    %91 = vector.extract_strided_slice %46 {offsets = [15, 0], sizes = [1, 128], strides = [1, 1]} : vector<16x128xf32> to vector<1x128xf32>
    %92 = vector.shape_cast %91 : vector<1x128xf32> to vector<128xf32>
    %93 = arith.maximumf %90, %92 : vector<128xf32>
    %c0_32 = arith.constant 0 : index
    %c0_33 = arith.constant 0 : index
    %94 = vector.load %arg2[%c0_32, %c0_33] : memref<14x128xf32, #tpu.memory_space<vmem>>, vector<1x128xf32>
    %95 = vector.shape_cast %94 : vector<1x128xf32> to vector<128xf32>
    %96 = vector.shape_cast %93 : vector<128xf32> to vector<1x128xf32>
    tpu.vector_store %arg2[%c0_32, %c0_33], %96 {strides = array<i32>} : memref<14x128xf32, #tpu.memory_space<vmem>>, vector<1x128xf32>,
    %c0_34 = arith.constant 0 : index
    %c0_35 = arith.constant 0 : index
    %c0_36 = arith.constant 0 : index
    %97 = vector.load %arg1[%c0_34, %c0_35, %c0_36] : memref<16x16x128xf32, #tpu.memory_space<vmem>>, vector<1x16x128xf32>
    %98 = vector.shape_cast %97 : vector<1x16x128xf32> to vector<16x128xf32>
    %c1_37 = arith.constant 1 : index
    %c0_38 = arith.constant 0 : index
    %c0_39 = arith.constant 0 : index
    %99 = vector.load %arg1[%c1_37, %c0_38, %c0_39] : memref<16x16x128xf32, #tpu.memory_space<vmem>>, vector<1x16x128xf32>
    %100 = vector.shape_cast %99 : vector<1x16x128xf32> to vector<16x128xf32>
    %101 = arith.maximumf %98, %100 : vector<16x128xf32>
    %c2_40 = arith.constant 2 : index
    %c0_41 = arith.constant 0 : index
    %c0_42 = arith.constant 0 : index
    %102 = vector.load %arg1[%c2_40, %c0_41, %c0_42] : memref<16x16x128xf32, #tpu.memory_space<vmem>>, vector<1x16x128xf32>
    %103 = vector.shape_cast %102 : vector<1x16x128xf32> to vector<16x128xf32>
    %104 = arith.maximumf %101, %103 : vector<16x128xf32>
    %c3_43 = arith.constant 3 : index
    %c0_44 = arith.constant 0 : index
    %c0_45 = arith.constant 0 : index
    %105 = vector.load %arg1[%c3_43, %c0_44, %c0_45] : memref<16x16x128xf32, #tpu.memory_space<vmem>>, vector<1x16x128xf32>
    %106 = vector.shape_cast %105 : vector<1x16x128xf32> to vector<16x128xf32>
    %107 = arith.maximumf %104, %106 : vector<16x128xf32>
    %c4_46 = arith.constant 4 : index
    %c0_47 = arith.constant 0 : index
    %c0_48 = arith.constant 0 : index
    %108 = vector.load %arg1[%c4_46, %c0_47, %c0_48] : memref<16x16x128xf32, #tpu.memory_space<vmem>>, vector<1x16x128xf32>
    %109 = vector.shape_cast %108 : vector<1x16x128xf32> to vector<16x128xf32>
    %110 = arith.maximumf %107, %109 : vector<16x128xf32>
    %c5_49 = arith.constant 5 : index
    %c0_50 = arith.constant 0 : index
    %c0_51 = arith.constant 0 : index
    %111 = vector.load %arg1[%c5_49, %c0_50, %c0_51] : memref<16x16x128xf32, #tpu.memory_space<vmem>>, vector<1x16x128xf32>
    %112 = vector.shape_cast %111 : vector<1x16x128xf32> to vector<16x128xf32>
    %113 = arith.maximumf %110, %112 : vector<16x128xf32>
    %c6_52 = arith.constant 6 : index
    %c0_53 = arith.constant 0 : index
    %c0_54 = arith.constant 0 : index
    %114 = vector.load %arg1[%c6_52, %c0_53, %c0_54] : memref<16x16x128xf32, #tpu.memory_space<vmem>>, vector<1x16x128xf32>
    %115 = vector.shape_cast %114 : vector<1x16x128xf32> to vector<16x128xf32>
    %116 = arith.maximumf %113, %115 : vector<16x128xf32>
    %c7_55 = arith.constant 7 : index
    %c0_56 = arith.constant 0 : index
    %c0_57 = arith.constant 0 : index
    %117 = vector.load %arg1[%c7_55, %c0_56, %c0_57] : memref<16x16x128xf32, #tpu.memory_space<vmem>>, vector<1x16x128xf32>
    %118 = vector.shape_cast %117 : vector<1x16x128xf32> to vector<16x128xf32>
    %119 = arith.maximumf %116, %118 : vector<16x128xf32>
    %120 = vector.extract_strided_slice %119 {offsets = [0, 0], sizes = [1, 128], strides = [1, 1]} : vector<16x128xf32> to vector<1x128xf32>
    %121 = vector.shape_cast %120 : vector<1x128xf32> to vector<128xf32>
    %122 = vector.extract_strided_slice %119 {offsets = [1, 0], sizes = [1, 128], strides = [1, 1]} : vector<16x128xf32> to vector<1x128xf32>
    %123 = vector.shape_cast %122 : vector<1x128xf32> to vector<128xf32>
    %124 = arith.maximumf %121, %123 : vector<128xf32>
    %125 = vector.extract_strided_slice %119 {offsets = [2, 0], sizes = [1, 128], strides = [1, 1]} : vector<16x128xf32> to vector<1x128xf32>
    %126 = vector.shape_cast %125 : vector<1x128xf32> to vector<128xf32>
    %127 = arith.maximumf %124, %126 : vector<128xf32>
    %128 = vector.extract_strided_slice %119 {offsets = [3, 0], sizes = [1, 128], strides = [1, 1]} : vector<16x128xf32> to vector<1x128xf32>
    %129 = vector.shape_cast %128 : vector<1x128xf32> to vector<128xf32>
    %130 = arith.maximumf %127, %129 : vector<128xf32>
    %131 = vector.extract_strided_slice %119 {offsets = [4, 0], sizes = [1, 128], strides = [1, 1]} : vector<16x128xf32> to vector<1x128xf32>
    %132 = vector.shape_cast %131 : vector<1x128xf32> to vector<128xf32>
    %133 = arith.maximumf %130, %132 : vector<128xf32>
    %134 = vector.extract_strided_slice %119 {offsets = [5, 0], sizes = [1, 128], strides = [1, 1]} : vector<16x128xf32> to vector<1x128xf32>
    %135 = vector.shape_cast %134 : vector<1x128xf32> to vector<128xf32>
    %136 = arith.maximumf %133, %135 : vector<128xf32>
    %137 = vector.extract_strided_slice %119 {offsets = [6, 0], sizes = [1, 128], strides = [1, 1]} : vector<16x128xf32> to vector<1x128xf32>
    %138 = vector.shape_cast %137 : vector<1x128xf32> to vector<128xf32>
    %139 = arith.maximumf %136, %138 : vector<128xf32>
    %140 = vector.extract_strided_slice %119 {offsets = [7, 0], sizes = [1, 128], strides = [1, 1]} : vector<16x128xf32> to vector<1x128xf32>
    %141 = vector.shape_cast %140 : vector<1x128xf32> to vector<128xf32>
    %142 = arith.maximumf %139, %141 : vector<128xf32>
    %c1_58 = arith.constant 1 : index
    %c0_59 = arith.constant 0 : index
    %143 = vector.load %arg2[%c1_58, %c0_59] : memref<14x128xf32, #tpu.memory_space<vmem>>, vector<1x128xf32>
    %144 = vector.shape_cast %143 : vector<1x128xf32> to vector<128xf32>
    %145 = vector.shape_cast %142 : vector<128xf32> to vector<1x128xf32>
    tpu.vector_store %arg2[%c1_58, %c0_59], %145 {strides = array<i32>} : memref<14x128xf32, #tpu.memory_space<vmem>>, vector<1x128xf32>,
    %146 = vector.extract_strided_slice %119 {offsets = [8, 0], sizes = [1, 128], strides = [1, 1]} : vector<16x128xf32> to vector<1x128xf32>
    %147 = vector.shape_cast %146 : vector<1x128xf32> to vector<128xf32>
    %148 = vector.extract_strided_slice %119 {offsets = [9, 0], sizes = [1, 128], strides = [1, 1]} : vector<16x128xf32> to vector<1x128xf32>
    %149 = vector.shape_cast %148 : vector<1x128xf32> to vector<128xf32>
    %150 = arith.maximumf %147, %149 : vector<128xf32>
    %151 = vector.extract_strided_slice %119 {offsets = [10, 0], sizes = [1, 128], strides = [1, 1]} : vector<16x128xf32> to vector<1x128xf32>
    %152 = vector.shape_cast %151 : vector<1x128xf32> to vector<128xf32>
    %153 = arith.maximumf %150, %152 : vector<128xf32>
    %154 = vector.extract_strided_slice %119 {offsets = [11, 0], sizes = [1, 128], strides = [1, 1]} : vector<16x128xf32> to vector<1x128xf32>
    %155 = vector.shape_cast %154 : vector<1x128xf32> to vector<128xf32>
    %156 = arith.maximumf %153, %155 : vector<128xf32>
    %157 = vector.extract_strided_slice %119 {offsets = [12, 0], sizes = [1, 128], strides = [1, 1]} : vector<16x128xf32> to vector<1x128xf32>
    %158 = vector.shape_cast %157 : vector<1x128xf32> to vector<128xf32>
    %159 = arith.maximumf %156, %158 : vector<128xf32>
    %160 = vector.extract_strided_slice %119 {offsets = [13, 0], sizes = [1, 128], strides = [1, 1]} : vector<16x128xf32> to vector<1x128xf32>
    %161 = vector.shape_cast %160 : vector<1x128xf32> to vector<128xf32>
    %162 = arith.maximumf %159, %161 : vector<128xf32>
    %163 = vector.extract_strided_slice %119 {offsets = [14, 0], sizes = [1, 128], strides = [1, 1]} : vector<16x128xf32> to vector<1x128xf32>
    %164 = vector.shape_cast %163 : vector<1x128xf32> to vector<128xf32>
    %165 = arith.maximumf %162, %164 : vector<128xf32>
    %166 = vector.extract_strided_slice %119 {offsets = [15, 0], sizes = [1, 128], strides = [1, 1]} : vector<16x128xf32> to vector<1x128xf32>
    %167 = vector.shape_cast %166 : vector<1x128xf32> to vector<128xf32>
    %168 = arith.maximumf %165, %167 : vector<128xf32>
    %c2_60 = arith.constant 2 : index
    %c0_61 = arith.constant 0 : index
    %169 = vector.load %arg2[%c2_60, %c0_61] : memref<14x128xf32, #tpu.memory_space<vmem>>, vector<1x128xf32>
    %170 = vector.shape_cast %169 : vector<1x128xf32> to vector<128xf32>
    %171 = vector.shape_cast %168 : vector<128xf32> to vector<1x128xf32>
    tpu.vector_store %arg2[%c2_60, %c0_61], %171 {strides = array<i32>} : memref<14x128xf32, #tpu.memory_space<vmem>>, vector<1x128xf32>,
    %c8_62 = arith.constant 8 : index
    %c0_63 = arith.constant 0 : index
    %c0_64 = arith.constant 0 : index
    %172 = vector.load %arg1[%c8_62, %c0_63, %c0_64] : memref<16x16x128xf32, #tpu.memory_space<vmem>>, vector<1x16x128xf32>
    %173 = vector.shape_cast %172 : vector<1x16x128xf32> to vector<16x128xf32>
    %c9_65 = arith.constant 9 : index
    %c0_66 = arith.constant 0 : index
    %c0_67 = arith.constant 0 : index
    %174 = vector.load %arg1[%c9_65, %c0_66, %c0_67] : memref<16x16x128xf32, #tpu.memory_space<vmem>>, vector<1x16x128xf32>
    %175 = vector.shape_cast %174 : vector<1x16x128xf32> to vector<16x128xf32>
    %176 = arith.maximumf %173, %175 : vector<16x128xf32>
    %c10_68 = arith.constant 10 : index
    %c0_69 = arith.constant 0 : index
    %c0_70 = arith.constant 0 : index
    %177 = vector.load %arg1[%c10_68, %c0_69, %c0_70] : memref<16x16x128xf32, #tpu.memory_space<vmem>>, vector<1x16x128xf32>
    %178 = vector.shape_cast %177 : vector<1x16x128xf32> to vector<16x128xf32>
    %179 = arith.maximumf %176, %178 : vector<16x128xf32>
    %c11_71 = arith.constant 11 : index
    %c0_72 = arith.constant 0 : index
    %c0_73 = arith.constant 0 : index
    %180 = vector.load %arg1[%c11_71, %c0_72, %c0_73] : memref<16x16x128xf32, #tpu.memory_space<vmem>>, vector<1x16x128xf32>
    %181 = vector.shape_cast %180 : vector<1x16x128xf32> to vector<16x128xf32>
    %182 = arith.maximumf %179, %181 : vector<16x128xf32>
    %c12_74 = arith.constant 12 : index
    %c0_75 = arith.constant 0 : index
    %c0_76 = arith.constant 0 : index
    %183 = vector.load %arg1[%c12_74, %c0_75, %c0_76] : memref<16x16x128xf32, #tpu.memory_space<vmem>>, vector<1x16x128xf32>
    %184 = vector.shape_cast %183 : vector<1x16x128xf32> to vector<16x128xf32>
    %185 = arith.maximumf %182, %184 : vector<16x128xf32>
    %c13_77 = arith.constant 13 : index
    %c0_78 = arith.constant 0 : index
    %c0_79 = arith.constant 0 : index
    %186 = vector.load %arg1[%c13_77, %c0_78, %c0_79] : memref<16x16x128xf32, #tpu.memory_space<vmem>>, vector<1x16x128xf32>
    %187 = vector.shape_cast %186 : vector<1x16x128xf32> to vector<16x128xf32>
    %188 = arith.maximumf %185, %187 : vector<16x128xf32>
    %c14_80 = arith.constant 14 : index
    %c0_81 = arith.constant 0 : index
    %c0_82 = arith.constant 0 : index
    %189 = vector.load %arg1[%c14_80, %c0_81, %c0_82] : memref<16x16x128xf32, #tpu.memory_space<vmem>>, vector<1x16x128xf32>
    %190 = vector.shape_cast %189 : vector<1x16x128xf32> to vector<16x128xf32>
    %191 = arith.maximumf %188, %190 : vector<16x128xf32>
    %c15_83 = arith.constant 15 : index
    %c0_84 = arith.constant 0 : index
    %c0_85 = arith.constant 0 : index
    %192 = vector.load %arg1[%c15_83, %c0_84, %c0_85] : memref<16x16x128xf32, #tpu.memory_space<vmem>>, vector<1x16x128xf32>
    %193 = vector.shape_cast %192 : vector<1x16x128xf32> to vector<16x128xf32>
    %194 = arith.maximumf %191, %193 : vector<16x128xf32>
    %195 = vector.extract_strided_slice %194 {offsets = [0, 0], sizes = [1, 128], strides = [1, 1]} : vector<16x128xf32> to vector<1x128xf32>
    %196 = vector.shape_cast %195 : vector<1x128xf32> to vector<128xf32>
    %197 = vector.extract_strided_slice %194 {offsets = [1, 0], sizes = [1, 128], strides = [1, 1]} : vector<16x128xf32> to vector<1x128xf32>
    %198 = vector.shape_cast %197 : vector<1x128xf32> to vector<128xf32>
    %199 = arith.maximumf %196, %198 : vector<128xf32>
    %200 = vector.extract_strided_slice %194 {offsets = [2, 0], sizes = [1, 128], strides = [1, 1]} : vector<16x128xf32> to vector<1x128xf32>
    %201 = vector.shape_cast %200 : vector<1x128xf32> to vector<128xf32>
    %202 = arith.maximumf %199, %201 : vector<128xf32>
    %203 = vector.extract_strided_slice %194 {offsets = [3, 0], sizes = [1, 128], strides = [1, 1]} : vector<16x128xf32> to vector<1x128xf32>
    %204 = vector.shape_cast %203 : vector<1x128xf32> to vector<128xf32>
    %205 = arith.maximumf %202, %204 : vector<128xf32>
    %206 = vector.extract_strided_slice %194 {offsets = [4, 0], sizes = [1, 128], strides = [1, 1]} : vector<16x128xf32> to vector<1x128xf32>
    %207 = vector.shape_cast %206 : vector<1x128xf32> to vector<128xf32>
    %208 = arith.maximumf %205, %207 : vector<128xf32>
    %209 = vector.extract_strided_slice %194 {offsets = [5, 0], sizes = [1, 128], strides = [1, 1]} : vector<16x128xf32> to vector<1x128xf32>
    %210 = vector.shape_cast %209 : vector<1x128xf32> to vector<128xf32>
    %211 = arith.maximumf %208, %210 : vector<128xf32>
    %212 = vector.extract_strided_slice %194 {offsets = [6, 0], sizes = [1, 128], strides = [1, 1]} : vector<16x128xf32> to vector<1x128xf32>
    %213 = vector.shape_cast %212 : vector<1x128xf32> to vector<128xf32>
    %214 = arith.maximumf %211, %213 : vector<128xf32>
    %215 = vector.extract_strided_slice %194 {offsets = [7, 0], sizes = [1, 128], strides = [1, 1]} : vector<16x128xf32> to vector<1x128xf32>
    %216 = vector.shape_cast %215 : vector<1x128xf32> to vector<128xf32>
    %217 = arith.maximumf %214, %216 : vector<128xf32>
    %c3_86 = arith.constant 3 : index
    %c0_87 = arith.constant 0 : index
    %218 = vector.load %arg2[%c3_86, %c0_87] : memref<14x128xf32, #tpu.memory_space<vmem>>, vector<1x128xf32>
    %219 = vector.shape_cast %218 : vector<1x128xf32> to vector<128xf32>
    %220 = vector.shape_cast %217 : vector<128xf32> to vector<1x128xf32>
    tpu.vector_store %arg2[%c3_86, %c0_87], %220 {strides = array<i32>} : memref<14x128xf32, #tpu.memory_space<vmem>>, vector<1x128xf32>,
    %221 = vector.extract_strided_slice %194 {offsets = [8, 0], sizes = [1, 128], strides = [1, 1]} : vector<16x128xf32> to vector<1x128xf32>
    %222 = vector.shape_cast %221 : vector<1x128xf32> to vector<128xf32>
    %223 = vector.extract_strided_slice %194 {offsets = [9, 0], sizes = [1, 128], strides = [1, 1]} : vector<16x128xf32> to vector<1x128xf32>
    %224 = vector.shape_cast %223 : vector<1x128xf32> to vector<128xf32>
    %225 = arith.maximumf %222, %224 : vector<128xf32>
    %226 = vector.extract_strided_slice %194 {offsets = [10, 0], sizes = [1, 128], strides = [1, 1]} : vector<16x128xf32> to vector<1x128xf32>
    %227 = vector.shape_cast %226 : vector<1x128xf32> to vector<128xf32>
    %228 = arith.maximumf %225, %227 : vector<128xf32>
    %229 = vector.extract_strided_slice %194 {offsets = [11, 0], sizes = [1, 128], strides = [1, 1]} : vector<16x128xf32> to vector<1x128xf32>
    %230 = vector.shape_cast %229 : vector<1x128xf32> to vector<128xf32>
    %231 = arith.maximumf %228, %230 : vector<128xf32>
    %232 = vector.extract_strided_slice %194 {offsets = [12, 0], sizes = [1, 128], strides = [1, 1]} : vector<16x128xf32> to vector<1x128xf32>
    %233 = vector.shape_cast %232 : vector<1x128xf32> to vector<128xf32>
    %234 = arith.maximumf %231, %233 : vector<128xf32>
    %235 = vector.extract_strided_slice %194 {offsets = [13, 0], sizes = [1, 128], strides = [1, 1]} : vector<16x128xf32> to vector<1x128xf32>
    %236 = vector.shape_cast %235 : vector<1x128xf32> to vector<128xf32>
    %237 = arith.maximumf %234, %236 : vector<128xf32>
    %238 = vector.extract_strided_slice %194 {offsets = [14, 0], sizes = [1, 128], strides = [1, 1]} : vector<16x128xf32> to vector<1x128xf32>
    %239 = vector.shape_cast %238 : vector<1x128xf32> to vector<128xf32>
    %240 = arith.maximumf %237, %239 : vector<128xf32>
    %241 = vector.extract_strided_slice %194 {offsets = [15, 0], sizes = [1, 128], strides = [1, 1]} : vector<16x128xf32> to vector<1x128xf32>
    %242 = vector.shape_cast %241 : vector<1x128xf32> to vector<128xf32>
    %243 = arith.maximumf %240, %242 : vector<128xf32>
    %c4_88 = arith.constant 4 : index
    %c0_89 = arith.constant 0 : index
    %244 = vector.load %arg2[%c4_88, %c0_89] : memref<14x128xf32, #tpu.memory_space<vmem>>, vector<1x128xf32>
    %245 = vector.shape_cast %244 : vector<1x128xf32> to vector<128xf32>
    %246 = vector.shape_cast %243 : vector<128xf32> to vector<1x128xf32>
    tpu.vector_store %arg2[%c4_88, %c0_89], %246 {strides = array<i32>} : memref<14x128xf32, #tpu.memory_space<vmem>>, vector<1x128xf32>,
    %c0_90 = arith.constant 0 : index
    %c0_91 = arith.constant 0 : index
    %c0_92 = arith.constant 0 : index
    %247 = vector.load %arg1[%c0_90, %c0_91, %c0_92] : memref<16x16x128xf32, #tpu.memory_space<vmem>>, vector<1x16x128xf32>
    %248 = vector.shape_cast %247 : vector<1x16x128xf32> to vector<16x128xf32>
    %c1_93 = arith.constant 1 : index
    %c0_94 = arith.constant 0 : index
    %c0_95 = arith.constant 0 : index
    %249 = vector.load %arg1[%c1_93, %c0_94, %c0_95] : memref<16x16x128xf32, #tpu.memory_space<vmem>>, vector<1x16x128xf32>
    %250 = vector.shape_cast %249 : vector<1x16x128xf32> to vector<16x128xf32>
    %251 = arith.maximumf %248, %250 : vector<16x128xf32>
    %c2_96 = arith.constant 2 : index
    %c0_97 = arith.constant 0 : index
    %c0_98 = arith.constant 0 : index
    %252 = vector.load %arg1[%c2_96, %c0_97, %c0_98] : memref<16x16x128xf32, #tpu.memory_space<vmem>>, vector<1x16x128xf32>
    %253 = vector.shape_cast %252 : vector<1x16x128xf32> to vector<16x128xf32>
    %254 = arith.maximumf %251, %253 : vector<16x128xf32>
    %c3_99 = arith.constant 3 : index
    %c0_100 = arith.constant 0 : index
    %c0_101 = arith.constant 0 : index
    %255 = vector.load %arg1[%c3_99, %c0_100, %c0_101] : memref<16x16x128xf32, #tpu.memory_space<vmem>>, vector<1x16x128xf32>
    %256 = vector.shape_cast %255 : vector<1x16x128xf32> to vector<16x128xf32>
    %257 = arith.maximumf %254, %256 : vector<16x128xf32>
    %c4_102 = arith.constant 4 : index
    %c0_103 = arith.constant 0 : index
    %c0_104 = arith.constant 0 : index
    %258 = vector.load %arg1[%c4_102, %c0_103, %c0_104] : memref<16x16x128xf32, #tpu.memory_space<vmem>>, vector<1x16x128xf32>
    %259 = vector.shape_cast %258 : vector<1x16x128xf32> to vector<16x128xf32>
    %260 = arith.maximumf %257, %259 : vector<16x128xf32>
    %261 = vector.extract_strided_slice %260 {offsets = [0, 0], sizes = [1, 128], strides = [1, 1]} : vector<16x128xf32> to vector<1x128xf32>
    %262 = vector.shape_cast %261 : vector<1x128xf32> to vector<128xf32>
    %263 = vector.extract_strided_slice %260 {offsets = [1, 0], sizes = [1, 128], strides = [1, 1]} : vector<16x128xf32> to vector<1x128xf32>
    %264 = vector.shape_cast %263 : vector<1x128xf32> to vector<128xf32>
    %265 = arith.maximumf %262, %264 : vector<128xf32>
    %266 = vector.extract_strided_slice %260 {offsets = [2, 0], sizes = [1, 128], strides = [1, 1]} : vector<16x128xf32> to vector<1x128xf32>
    %267 = vector.shape_cast %266 : vector<1x128xf32> to vector<128xf32>
    %268 = arith.maximumf %265, %267 : vector<128xf32>
    %269 = vector.extract_strided_slice %260 {offsets = [3, 0], sizes = [1, 128], strides = [1, 1]} : vector<16x128xf32> to vector<1x128xf32>
    %270 = vector.shape_cast %269 : vector<1x128xf32> to vector<128xf32>
    %271 = arith.maximumf %268, %270 : vector<128xf32>
    %272 = vector.extract_strided_slice %260 {offsets = [4, 0], sizes = [1, 128], strides = [1, 1]} : vector<16x128xf32> to vector<1x128xf32>
    %273 = vector.shape_cast %272 : vector<1x128xf32> to vector<128xf32>
    %274 = arith.maximumf %271, %273 : vector<128xf32>
    %cst = arith.constant 0.000000e+00 : f32
    %275 = vector.broadcast %cst : f32 to vector<128xf32>
    %276 = arith.maximumf %274, %275 : vector<128xf32>
    %c5_105 = arith.constant 5 : index
    %c0_106 = arith.constant 0 : index
    %277 = vector.load %arg2[%c5_105, %c0_106] : memref<14x128xf32, #tpu.memory_space<vmem>>, vector<1x128xf32>
    %278 = vector.shape_cast %277 : vector<1x128xf32> to vector<128xf32>
    %279 = vector.shape_cast %276 : vector<128xf32> to vector<1x128xf32>
    tpu.vector_store %arg2[%c5_105, %c0_106], %279 {strides = array<i32>} : memref<14x128xf32, #tpu.memory_space<vmem>>, vector<1x128xf32>,
    %280 = vector.extract_strided_slice %260 {offsets = [5, 0], sizes = [1, 128], strides = [1, 1]} : vector<16x128xf32> to vector<1x128xf32>
    %281 = vector.shape_cast %280 : vector<1x128xf32> to vector<128xf32>
    %282 = vector.extract_strided_slice %260 {offsets = [6, 0], sizes = [1, 128], strides = [1, 1]} : vector<16x128xf32> to vector<1x128xf32>
    %283 = vector.shape_cast %282 : vector<1x128xf32> to vector<128xf32>
    %284 = arith.maximumf %281, %283 : vector<128xf32>
    %285 = vector.extract_strided_slice %260 {offsets = [7, 0], sizes = [1, 128], strides = [1, 1]} : vector<16x128xf32> to vector<1x128xf32>
    %286 = vector.shape_cast %285 : vector<1x128xf32> to vector<128xf32>
    %287 = arith.maximumf %284, %286 : vector<128xf32>
    %288 = vector.extract_strided_slice %260 {offsets = [8, 0], sizes = [1, 128], strides = [1, 1]} : vector<16x128xf32> to vector<1x128xf32>
    %289 = vector.shape_cast %288 : vector<1x128xf32> to vector<128xf32>
    %290 = arith.maximumf %287, %289 : vector<128xf32>
    %291 = vector.extract_strided_slice %260 {offsets = [9, 0], sizes = [1, 128], strides = [1, 1]} : vector<16x128xf32> to vector<1x128xf32>
    %292 = vector.shape_cast %291 : vector<1x128xf32> to vector<128xf32>
    %293 = arith.maximumf %290, %292 : vector<128xf32>
    %294 = vector.extract_strided_slice %260 {offsets = [10, 0], sizes = [1, 128], strides = [1, 1]} : vector<16x128xf32> to vector<1x128xf32>
    %295 = vector.shape_cast %294 : vector<1x128xf32> to vector<128xf32>
    %296 = arith.maximumf %293, %295 : vector<128xf32>
    %cst_107 = arith.constant 0.000000e+00 : f32
    %297 = vector.broadcast %cst_107 : f32 to vector<128xf32>
    %298 = arith.maximumf %296, %297 : vector<128xf32>
    %c6_108 = arith.constant 6 : index
    %c0_109 = arith.constant 0 : index
    %299 = vector.load %arg2[%c6_108, %c0_109] : memref<14x128xf32, #tpu.memory_space<vmem>>, vector<1x128xf32>
    %300 = vector.shape_cast %299 : vector<1x128xf32> to vector<128xf32>
    %301 = vector.shape_cast %298 : vector<128xf32> to vector<1x128xf32>
    tpu.vector_store %arg2[%c6_108, %c0_109], %301 {strides = array<i32>} : memref<14x128xf32, #tpu.memory_space<vmem>>, vector<1x128xf32>,
    %302 = vector.extract_strided_slice %260 {offsets = [11, 0], sizes = [1, 128], strides = [1, 1]} : vector<16x128xf32> to vector<1x128xf32>
    %303 = vector.shape_cast %302 : vector<1x128xf32> to vector<128xf32>
    %304 = vector.extract_strided_slice %260 {offsets = [12, 0], sizes = [1, 128], strides = [1, 1]} : vector<16x128xf32> to vector<1x128xf32>
    %305 = vector.shape_cast %304 : vector<1x128xf32> to vector<128xf32>
    %306 = arith.maximumf %303, %305 : vector<128xf32>
    %307 = vector.extract_strided_slice %260 {offsets = [13, 0], sizes = [1, 128], strides = [1, 1]} : vector<16x128xf32> to vector<1x128xf32>
    %308 = vector.shape_cast %307 : vector<1x128xf32> to vector<128xf32>
    %309 = arith.maximumf %306, %308 : vector<128xf32>
    %310 = vector.extract_strided_slice %260 {offsets = [14, 0], sizes = [1, 128], strides = [1, 1]} : vector<16x128xf32> to vector<1x128xf32>
    %311 = vector.shape_cast %310 : vector<1x128xf32> to vector<128xf32>
    %312 = arith.maximumf %309, %311 : vector<128xf32>
    %313 = vector.extract_strided_slice %260 {offsets = [15, 0], sizes = [1, 128], strides = [1, 1]} : vector<16x128xf32> to vector<1x128xf32>
    %314 = vector.shape_cast %313 : vector<1x128xf32> to vector<128xf32>
    %315 = arith.maximumf %312, %314 : vector<128xf32>
    %cst_110 = arith.constant 0.000000e+00 : f32
    %316 = vector.broadcast %cst_110 : f32 to vector<128xf32>
    %317 = arith.maximumf %315, %316 : vector<128xf32>
    %c7_111 = arith.constant 7 : index
    %c0_112 = arith.constant 0 : index
    %318 = vector.load %arg2[%c7_111, %c0_112] : memref<14x128xf32, #tpu.memory_space<vmem>>, vector<1x128xf32>
    %319 = vector.shape_cast %318 : vector<1x128xf32> to vector<128xf32>
    %320 = vector.shape_cast %317 : vector<128xf32> to vector<1x128xf32>
    tpu.vector_store %arg2[%c7_111, %c0_112], %320 {strides = array<i32>} : memref<14x128xf32, #tpu.memory_space<vmem>>, vector<1x128xf32>,
    %c5_113 = arith.constant 5 : index
    %c0_114 = arith.constant 0 : index
    %c0_115 = arith.constant 0 : index
    %321 = vector.load %arg1[%c5_113, %c0_114, %c0_115] : memref<16x16x128xf32, #tpu.memory_space<vmem>>, vector<1x16x128xf32>
    %322 = vector.shape_cast %321 : vector<1x16x128xf32> to vector<16x128xf32>
    %c6_116 = arith.constant 6 : index
    %c0_117 = arith.constant 0 : index
    %c0_118 = arith.constant 0 : index
    %323 = vector.load %arg1[%c6_116, %c0_117, %c0_118] : memref<16x16x128xf32, #tpu.memory_space<vmem>>, vector<1x16x128xf32>
    %324 = vector.shape_cast %323 : vector<1x16x128xf32> to vector<16x128xf32>
    %325 = arith.maximumf %322, %324 : vector<16x128xf32>
    %c7_119 = arith.constant 7 : index
    %c0_120 = arith.constant 0 : index
    %c0_121 = arith.constant 0 : index
    %326 = vector.load %arg1[%c7_119, %c0_120, %c0_121] : memref<16x16x128xf32, #tpu.memory_space<vmem>>, vector<1x16x128xf32>
    %327 = vector.shape_cast %326 : vector<1x16x128xf32> to vector<16x128xf32>
    %328 = arith.maximumf %325, %327 : vector<16x128xf32>
    %c8_122 = arith.constant 8 : index
    %c0_123 = arith.constant 0 : index
    %c0_124 = arith.constant 0 : index
    %329 = vector.load %arg1[%c8_122, %c0_123, %c0_124] : memref<16x16x128xf32, #tpu.memory_space<vmem>>, vector<1x16x128xf32>
    %330 = vector.shape_cast %329 : vector<1x16x128xf32> to vector<16x128xf32>
    %331 = arith.maximumf %328, %330 : vector<16x128xf32>
    %c9_125 = arith.constant 9 : index
    %c0_126 = arith.constant 0 : index
    %c0_127 = arith.constant 0 : index
    %332 = vector.load %arg1[%c9_125, %c0_126, %c0_127] : memref<16x16x128xf32, #tpu.memory_space<vmem>>, vector<1x16x128xf32>
    %333 = vector.shape_cast %332 : vector<1x16x128xf32> to vector<16x128xf32>
    %334 = arith.maximumf %331, %333 : vector<16x128xf32>
    %c10_128 = arith.constant 10 : index
    %c0_129 = arith.constant 0 : index
    %c0_130 = arith.constant 0 : index
    %335 = vector.load %arg1[%c10_128, %c0_129, %c0_130] : memref<16x16x128xf32, #tpu.memory_space<vmem>>, vector<1x16x128xf32>
    %336 = vector.shape_cast %335 : vector<1x16x128xf32> to vector<16x128xf32>
    %337 = arith.maximumf %334, %336 : vector<16x128xf32>
    %338 = vector.extract_strided_slice %337 {offsets = [0, 0], sizes = [1, 128], strides = [1, 1]} : vector<16x128xf32> to vector<1x128xf32>
    %339 = vector.shape_cast %338 : vector<1x128xf32> to vector<128xf32>
    %340 = vector.extract_strided_slice %337 {offsets = [1, 0], sizes = [1, 128], strides = [1, 1]} : vector<16x128xf32> to vector<1x128xf32>
    %341 = vector.shape_cast %340 : vector<1x128xf32> to vector<128xf32>
    %342 = arith.maximumf %339, %341 : vector<128xf32>
    %343 = vector.extract_strided_slice %337 {offsets = [2, 0], sizes = [1, 128], strides = [1, 1]} : vector<16x128xf32> to vector<1x128xf32>
    %344 = vector.shape_cast %343 : vector<1x128xf32> to vector<128xf32>
    %345 = arith.maximumf %342, %344 : vector<128xf32>
    %346 = vector.extract_strided_slice %337 {offsets = [3, 0], sizes = [1, 128], strides = [1, 1]} : vector<16x128xf32> to vector<1x128xf32>
    %347 = vector.shape_cast %346 : vector<1x128xf32> to vector<128xf32>
    %348 = arith.maximumf %345, %347 : vector<128xf32>
    %349 = vector.extract_strided_slice %337 {offsets = [4, 0], sizes = [1, 128], strides = [1, 1]} : vector<16x128xf32> to vector<1x128xf32>
    %350 = vector.shape_cast %349 : vector<1x128xf32> to vector<128xf32>
    %351 = arith.maximumf %348, %350 : vector<128xf32>
    %cst_131 = arith.constant 0.000000e+00 : f32
    %352 = vector.broadcast %cst_131 : f32 to vector<128xf32>
    %353 = arith.maximumf %351, %352 : vector<128xf32>
    %c8_132 = arith.constant 8 : index
    %c0_133 = arith.constant 0 : index
    %354 = vector.load %arg2[%c8_132, %c0_133] : memref<14x128xf32, #tpu.memory_space<vmem>>, vector<1x128xf32>
    %355 = vector.shape_cast %354 : vector<1x128xf32> to vector<128xf32>
    %356 = vector.shape_cast %353 : vector<128xf32> to vector<1x128xf32>
    tpu.vector_store %arg2[%c8_132, %c0_133], %356 {strides = array<i32>} : memref<14x128xf32, #tpu.memory_space<vmem>>, vector<1x128xf32>,
    %357 = vector.extract_strided_slice %337 {offsets = [5, 0], sizes = [1, 128], strides = [1, 1]} : vector<16x128xf32> to vector<1x128xf32>
    %358 = vector.shape_cast %357 : vector<1x128xf32> to vector<128xf32>
    %359 = vector.extract_strided_slice %337 {offsets = [6, 0], sizes = [1, 128], strides = [1, 1]} : vector<16x128xf32> to vector<1x128xf32>
    %360 = vector.shape_cast %359 : vector<1x128xf32> to vector<128xf32>
    %361 = arith.maximumf %358, %360 : vector<128xf32>
    %362 = vector.extract_strided_slice %337 {offsets = [7, 0], sizes = [1, 128], strides = [1, 1]} : vector<16x128xf32> to vector<1x128xf32>
    %363 = vector.shape_cast %362 : vector<1x128xf32> to vector<128xf32>
    %364 = arith.maximumf %361, %363 : vector<128xf32>
    %365 = vector.extract_strided_slice %337 {offsets = [8, 0], sizes = [1, 128], strides = [1, 1]} : vector<16x128xf32> to vector<1x128xf32>
    %366 = vector.shape_cast %365 : vector<1x128xf32> to vector<128xf32>
    %367 = arith.maximumf %364, %366 : vector<128xf32>
    %368 = vector.extract_strided_slice %337 {offsets = [9, 0], sizes = [1, 128], strides = [1, 1]} : vector<16x128xf32> to vector<1x128xf32>
    %369 = vector.shape_cast %368 : vector<1x128xf32> to vector<128xf32>
    %370 = arith.maximumf %367, %369 : vector<128xf32>
    %371 = vector.extract_strided_slice %337 {offsets = [10, 0], sizes = [1, 128], strides = [1, 1]} : vector<16x128xf32> to vector<1x128xf32>
    %372 = vector.shape_cast %371 : vector<1x128xf32> to vector<128xf32>
    %373 = arith.maximumf %370, %372 : vector<128xf32>
    %c9_134 = arith.constant 9 : index
    %c0_135 = arith.constant 0 : index
    %374 = vector.load %arg2[%c9_134, %c0_135] : memref<14x128xf32, #tpu.memory_space<vmem>>, vector<1x128xf32>
    %375 = vector.shape_cast %374 : vector<1x128xf32> to vector<128xf32>
    %376 = vector.shape_cast %373 : vector<128xf32> to vector<1x128xf32>
    tpu.vector_store %arg2[%c9_134, %c0_135], %376 {strides = array<i32>} : memref<14x128xf32, #tpu.memory_space<vmem>>, vector<1x128xf32>,
    %377 = vector.extract_strided_slice %337 {offsets = [11, 0], sizes = [1, 128], strides = [1, 1]} : vector<16x128xf32> to vector<1x128xf32>
    %378 = vector.shape_cast %377 : vector<1x128xf32> to vector<128xf32>
    %379 = vector.extract_strided_slice %337 {offsets = [12, 0], sizes = [1, 128], strides = [1, 1]} : vector<16x128xf32> to vector<1x128xf32>
    %380 = vector.shape_cast %379 : vector<1x128xf32> to vector<128xf32>
    %381 = arith.maximumf %378, %380 : vector<128xf32>
    %382 = vector.extract_strided_slice %337 {offsets = [13, 0], sizes = [1, 128], strides = [1, 1]} : vector<16x128xf32> to vector<1x128xf32>
    %383 = vector.shape_cast %382 : vector<1x128xf32> to vector<128xf32>
    %384 = arith.maximumf %381, %383 : vector<128xf32>
    %385 = vector.extract_strided_slice %337 {offsets = [14, 0], sizes = [1, 128], strides = [1, 1]} : vector<16x128xf32> to vector<1x128xf32>
    %386 = vector.shape_cast %385 : vector<1x128xf32> to vector<128xf32>
    %387 = arith.maximumf %384, %386 : vector<128xf32>
    %388 = vector.extract_strided_slice %337 {offsets = [15, 0], sizes = [1, 128], strides = [1, 1]} : vector<16x128xf32> to vector<1x128xf32>
    %389 = vector.shape_cast %388 : vector<1x128xf32> to vector<128xf32>
    %390 = arith.maximumf %387, %389 : vector<128xf32>
    %cst_136 = arith.constant 0.000000e+00 : f32
    %391 = vector.broadcast %cst_136 : f32 to vector<128xf32>
    %392 = arith.maximumf %390, %391 : vector<128xf32>
    %c10_137 = arith.constant 10 : index
    %c0_138 = arith.constant 0 : index
    %393 = vector.load %arg2[%c10_137, %c0_138] : memref<14x128xf32, #tpu.memory_space<vmem>>, vector<1x128xf32>
    %394 = vector.shape_cast %393 : vector<1x128xf32> to vector<128xf32>
    %395 = vector.shape_cast %392 : vector<128xf32> to vector<1x128xf32>
    tpu.vector_store %arg2[%c10_137, %c0_138], %395 {strides = array<i32>} : memref<14x128xf32, #tpu.memory_space<vmem>>, vector<1x128xf32>,
    %c11_139 = arith.constant 11 : index
    %c0_140 = arith.constant 0 : index
    %c0_141 = arith.constant 0 : index
    %396 = vector.load %arg1[%c11_139, %c0_140, %c0_141] : memref<16x16x128xf32, #tpu.memory_space<vmem>>, vector<1x16x128xf32>
    %397 = vector.shape_cast %396 : vector<1x16x128xf32> to vector<16x128xf32>
    %c12_142 = arith.constant 12 : index
    %c0_143 = arith.constant 0 : index
    %c0_144 = arith.constant 0 : index
    %398 = vector.load %arg1[%c12_142, %c0_143, %c0_144] : memref<16x16x128xf32, #tpu.memory_space<vmem>>, vector<1x16x128xf32>
    %399 = vector.shape_cast %398 : vector<1x16x128xf32> to vector<16x128xf32>
    %400 = arith.maximumf %397, %399 : vector<16x128xf32>
    %c13_145 = arith.constant 13 : index
    %c0_146 = arith.constant 0 : index
    %c0_147 = arith.constant 0 : index
    %401 = vector.load %arg1[%c13_145, %c0_146, %c0_147] : memref<16x16x128xf32, #tpu.memory_space<vmem>>, vector<1x16x128xf32>
    %402 = vector.shape_cast %401 : vector<1x16x128xf32> to vector<16x128xf32>
    %403 = arith.maximumf %400, %402 : vector<16x128xf32>
    %c14_148 = arith.constant 14 : index
    %c0_149 = arith.constant 0 : index
    %c0_150 = arith.constant 0 : index
    %404 = vector.load %arg1[%c14_148, %c0_149, %c0_150] : memref<16x16x128xf32, #tpu.memory_space<vmem>>, vector<1x16x128xf32>
    %405 = vector.shape_cast %404 : vector<1x16x128xf32> to vector<16x128xf32>
    %406 = arith.maximumf %403, %405 : vector<16x128xf32>
    %c15_151 = arith.constant 15 : index
    %c0_152 = arith.constant 0 : index
    %c0_153 = arith.constant 0 : index
    %407 = vector.load %arg1[%c15_151, %c0_152, %c0_153] : memref<16x16x128xf32, #tpu.memory_space<vmem>>, vector<1x16x128xf32>
    %408 = vector.shape_cast %407 : vector<1x16x128xf32> to vector<16x128xf32>
    %409 = arith.maximumf %406, %408 : vector<16x128xf32>
    %410 = vector.extract_strided_slice %409 {offsets = [0, 0], sizes = [1, 128], strides = [1, 1]} : vector<16x128xf32> to vector<1x128xf32>
    %411 = vector.shape_cast %410 : vector<1x128xf32> to vector<128xf32>
    %412 = vector.extract_strided_slice %409 {offsets = [1, 0], sizes = [1, 128], strides = [1, 1]} : vector<16x128xf32> to vector<1x128xf32>
    %413 = vector.shape_cast %412 : vector<1x128xf32> to vector<128xf32>
    %414 = arith.maximumf %411, %413 : vector<128xf32>
    %415 = vector.extract_strided_slice %409 {offsets = [2, 0], sizes = [1, 128], strides = [1, 1]} : vector<16x128xf32> to vector<1x128xf32>
    %416 = vector.shape_cast %415 : vector<1x128xf32> to vector<128xf32>
    %417 = arith.maximumf %414, %416 : vector<128xf32>
    %418 = vector.extract_strided_slice %409 {offsets = [3, 0], sizes = [1, 128], strides = [1, 1]} : vector<16x128xf32> to vector<1x128xf32>
    %419 = vector.shape_cast %418 : vector<1x128xf32> to vector<128xf32>
    %420 = arith.maximumf %417, %419 : vector<128xf32>
    %421 = vector.extract_strided_slice %409 {offsets = [4, 0], sizes = [1, 128], strides = [1, 1]} : vector<16x128xf32> to vector<1x128xf32>
    %422 = vector.shape_cast %421 : vector<1x128xf32> to vector<128xf32>
    %423 = arith.maximumf %420, %422 : vector<128xf32>
    %cst_154 = arith.constant 0.000000e+00 : f32
    %424 = vector.broadcast %cst_154 : f32 to vector<128xf32>
    %425 = arith.maximumf %423, %424 : vector<128xf32>
    %c11_155 = arith.constant 11 : index
    %c0_156 = arith.constant 0 : index
    %426 = vector.load %arg2[%c11_155, %c0_156] : memref<14x128xf32, #tpu.memory_space<vmem>>, vector<1x128xf32>
    %427 = vector.shape_cast %426 : vector<1x128xf32> to vector<128xf32>
    %428 = vector.shape_cast %425 : vector<128xf32> to vector<1x128xf32>
    tpu.vector_store %arg2[%c11_155, %c0_156], %428 {strides = array<i32>} : memref<14x128xf32, #tpu.memory_space<vmem>>, vector<1x128xf32>,
    %429 = vector.extract_strided_slice %409 {offsets = [5, 0], sizes = [1, 128], strides = [1, 1]} : vector<16x128xf32> to vector<1x128xf32>
    %430 = vector.shape_cast %429 : vector<1x128xf32> to vector<128xf32>
    %431 = vector.extract_strided_slice %409 {offsets = [6, 0], sizes = [1, 128], strides = [1, 1]} : vector<16x128xf32> to vector<1x128xf32>
    %432 = vector.shape_cast %431 : vector<1x128xf32> to vector<128xf32>
    %433 = arith.maximumf %430, %432 : vector<128xf32>
    %434 = vector.extract_strided_slice %409 {offsets = [7, 0], sizes = [1, 128], strides = [1, 1]} : vector<16x128xf32> to vector<1x128xf32>
    %435 = vector.shape_cast %434 : vector<1x128xf32> to vector<128xf32>
    %436 = arith.maximumf %433, %435 : vector<128xf32>
    %437 = vector.extract_strided_slice %409 {offsets = [8, 0], sizes = [1, 128], strides = [1, 1]} : vector<16x128xf32> to vector<1x128xf32>
    %438 = vector.shape_cast %437 : vector<1x128xf32> to vector<128xf32>
    %439 = arith.maximumf %436, %438 : vector<128xf32>
    %440 = vector.extract_strided_slice %409 {offsets = [9, 0], sizes = [1, 128], strides = [1, 1]} : vector<16x128xf32> to vector<1x128xf32>
    %441 = vector.shape_cast %440 : vector<1x128xf32> to vector<128xf32>
    %442 = arith.maximumf %439, %441 : vector<128xf32>
    %443 = vector.extract_strided_slice %409 {offsets = [10, 0], sizes = [1, 128], strides = [1, 1]} : vector<16x128xf32> to vector<1x128xf32>
    %444 = vector.shape_cast %443 : vector<1x128xf32> to vector<128xf32>
    %445 = arith.maximumf %442, %444 : vector<128xf32>
    %cst_157 = arith.constant 0.000000e+00 : f32
    %446 = vector.broadcast %cst_157 : f32 to vector<128xf32>
    %447 = arith.maximumf %445, %446 : vector<128xf32>
    %c12_158 = arith.constant 12 : index
    %c0_159 = arith.constant 0 : index
    %448 = vector.load %arg2[%c12_158, %c0_159] : memref<14x128xf32, #tpu.memory_space<vmem>>, vector<1x128xf32>
    %449 = vector.shape_cast %448 : vector<1x128xf32> to vector<128xf32>
    %450 = vector.shape_cast %447 : vector<128xf32> to vector<1x128xf32>
    tpu.vector_store %arg2[%c12_158, %c0_159], %450 {strides = array<i32>} : memref<14x128xf32, #tpu.memory_space<vmem>>, vector<1x128xf32>,
    %451 = vector.extract_strided_slice %409 {offsets = [11, 0], sizes = [1, 128], strides = [1, 1]} : vector<16x128xf32> to vector<1x128xf32>
    %452 = vector.shape_cast %451 : vector<1x128xf32> to vector<128xf32>
    %453 = vector.extract_strided_slice %409 {offsets = [12, 0], sizes = [1, 128], strides = [1, 1]} : vector<16x128xf32> to vector<1x128xf32>
    %454 = vector.shape_cast %453 : vector<1x128xf32> to vector<128xf32>
    %455 = arith.maximumf %452, %454 : vector<128xf32>
    %456 = vector.extract_strided_slice %409 {offsets = [13, 0], sizes = [1, 128], strides = [1, 1]} : vector<16x128xf32> to vector<1x128xf32>
    %457 = vector.shape_cast %456 : vector<1x128xf32> to vector<128xf32>
    %458 = arith.maximumf %455, %457 : vector<128xf32>
    %459 = vector.extract_strided_slice %409 {offsets = [14, 0], sizes = [1, 128], strides = [1, 1]} : vector<16x128xf32> to vector<1x128xf32>
    %460 = vector.shape_cast %459 : vector<1x128xf32> to vector<128xf32>
    %461 = arith.maximumf %458, %460 : vector<128xf32>
    %462 = vector.extract_strided_slice %409 {offsets = [15, 0], sizes = [1, 128], strides = [1, 1]} : vector<16x128xf32> to vector<1x128xf32>
    %463 = vector.shape_cast %462 : vector<1x128xf32> to vector<128xf32>
    %464 = arith.maximumf %461, %463 : vector<128xf32>
    %cst_160 = arith.constant 0.000000e+00 : f32
    %465 = vector.broadcast %cst_160 : f32 to vector<128xf32>
    %466 = arith.maximumf %464, %465 : vector<128xf32>
    %c13_161 = arith.constant 13 : index
    %c0_162 = arith.constant 0 : index
    %467 = vector.load %arg2[%c13_161, %c0_162] : memref<14x128xf32, #tpu.memory_space<vmem>>, vector<1x128xf32>
    %468 = vector.shape_cast %467 : vector<1x128xf32> to vector<128xf32>
    %469 = vector.shape_cast %466 : vector<128xf32> to vector<1x128xf32>
    tpu.vector_store %arg2[%c13_161, %c0_162], %469 {strides = array<i32>} : memref<14x128xf32, #tpu.memory_space<vmem>>, vector<1x128xf32>,
    return
  }
  func.func @transform_0(%arg0: i32) -> (i32, i32, i32) {
    %c0_i32 = arith.constant 0 : i32
    %c0_i32_0 = arith.constant 0 : i32
    %c0_i32_1 = arith.constant 0 : i32
    return %c0_i32, %c0_i32_0, %arg0 : i32, i32, i32
  }
  func.func @transform_1(%arg0: i32) -> (i32, i32) {
    %c0_i32 = arith.constant 0 : i32
    %c0_i32_0 = arith.constant 0 : i32
    return %c0_i32, %arg0 : i32, i32
  }
}

</mosaic_0001>

<bundles_post_ra>
// kernel: tpu_custom_call.1
= control target key start
LH: loop header
LB: loop body
LE: loop exit
PB: predicated region body
PF: predicated region fallthrough
CT: control target
= control target key end

     0   :  { %6 = vsyncpa [#allocation3], 0  ;;  %s764_s0 = inlined_call_operand.hbm [shape: f32[16,16,128], index: 0, kind: input, shape index: {}]   ;;  %s765_s1 = inlined_call_operand.hbm [shape: f32[14,128], index: 1, kind: output, shape index: {}]  }
   0x1   :  { %7 = vsyncpa [#allocation4], 0  ;;  %s535_s6 = smov [#allocation2]   ;;  %s487_s10 = scalar_lea.hbm %s764_s0, 4096 }
   0x2   :  { %s13_s7 = sshll.u32 %s535_s6, 4  ;;  %p488_p0 = scmp.ne.s32.totalorder %s764_s0, %s487_s10  ;;  %s14_s7 = int_to_ptr.vmem [resolvable:$true] %s13_s7 }
   0x3   :  { %p491_p1 = scmp.lt.u32.totalorder %s487_s10, %s764_s0 }
   0x5   :  { %p493_p2 = pnand %p491_p1, %p488_p0 }
   0x7   :  { %496 = shalt.err (!%p493_p2)
}
   0x8   :  { %s497_s15 = scalar_lea.vmem %s14_s7, 4096  ;;  %p502_p4 = scmp.lt.s32.totalorder %s14_s7, %s14_s7 }
   0x9   :  { %p498_p3 = scmp.ne.s32.totalorder %s14_s7, %s497_s15  ;;  %p503_p5 = scmp.lt.s32.totalorder %s497_s15, %s497_s15 }
   0xb   :  { %p504_p6 = por %p503_p5, %p502_p4 }
   0xd   :  { %p505_p7 = pnand %p504_p6, %p498_p3 }
   0xf   :  { %508 = shalt.err (!%p505_p7)
}
  0x10   :  { %s536_s16 = smov 128   ;;  %s537_s17 = smov 8  }
  0x11   :  { %19 = dma.hbm_to_vmem [thread:$0]  %s764_s0, 4096, %s14_s7, [#allocation3], %s536_s16, %s536_s16, %s537_s17  }
  0x12   :  { %531 = dma.done.wait [#allocation3], 4096  }
  0x13   :  { %532 = vsyncadd [#allocation3], 4294963200  ;;  %v23_v0 = vld [vmem:[#allocation2] sm:$0xff]  ;;  %v24_v1 = vld [vmem:[#allocation2 + $0x8] sm:$0xff]  ;;  %s538_s0 = smov [#allocation5]  }
  0x14   :  { %v26_v2 = vld [vmem:[#allocation2 + $0x10] sm:$0xff]  ;;  %v27_v3 = vld [vmem:[#allocation2 + $0x18] sm:$0xff]  ;;  %v31_v5 = vld [vmem:[#allocation2 + $0x20] sm:$0xff]  ;;  %s471_s20 = sshll.u32 %s538_s0, 4  ;;  %s472_s20 = int_to_ptr.vmem [resolvable:$true] %s471_s20 }
  0x15   :  { %v28_v4 = vmax.f32 %v23_v0, %v26_v2  ;;  %v32_v6 = vld [vmem:[#allocation2 + $0x28] sm:$0xff]  ;;  %v29_v7 = vmax.f32 %v24_v1, %v27_v3  ;;  %v36_v8 = vld [vmem:[#allocation2 + $0x30] sm:$0xff]  ;;  %v37_v10 = vld [vmem:[#allocation2 + $0x38] sm:$0xff]  ;;  %s509_s21 = scalar_lea.vmem %s472_s20, 256  ;;  %p514_p9 = scmp.lt.s32.totalorder %s472_s20, %s472_s20 }
  0x16   :  { %v41_v12 = vld [vmem:[#allocation2 + $0x40] sm:$0xff]  ;;  %v42_v13 = vld [vmem:[#allocation2 + $0x48] sm:$0xff]  ;;  %v46_v15 = vld [vmem:[#allocation2 + $0x50] sm:$0xff]  ;;  %p510_p8 = scmp.ne.s32.totalorder %s472_s20, %s509_s21  ;;  %p515_p10 = scmp.lt.s32.totalorder %s509_s21, %s509_s21 }
  0x17   :  { %v33_v9 = vmax.f32 %v28_v4, %v31_v5  ;;  %v34_v11 = vmax.f32 %v29_v7, %v32_v6  ;;  %v51_v16 = vld [vmem:[#allocation2 + $0x60] sm:$0xff]  ;;  %v566_v19 = vld [vmem:[#allocation2 + $0x88] sm:$0xff]  ;;  %v568_v20 = vld [vmem:[#allocation2 + $0x90] sm:$0xff] }
  0x18   :  { %v564_v17 = vld [vmem:[#allocation2 + $0x80] sm:$0xff]  ;;  %v570_v21 = vld [vmem:[#allocation2 + $0x98] sm:$0xff]  ;;  %v52_v24 = vld [vmem:[#allocation2 + $0x68] sm:$0xff]  ;;  %v357_v28 = vmax.f32 %v46_v15, %v51_v16  ;;  %p516_p11 = por %p515_p10, %p514_p9 }
  0x19   :  { %v38_v14 = vmax.f32 %v33_v9, %v36_v8  ;;  %v39_v18 = vmax.f32 %v34_v11, %v37_v10  ;;  %v47_v23 = vld [vmem:[#allocation2 + $0x58] sm:$0xff]  ;;  %v574_v25 = vld [vmem:[#allocation2 + $0xa8] sm:$0xff]  ;;  %v226_v26 = vmax.f32 %v564_v17, %v568_v20  ;;  %v227_v27 = vmax.f32 %v566_v19, %v570_v21  ;;  %v582_v30 = vld [vmem:[#allocation2 + $0xa0] sm:$0xff] }
  0x1a   :  { %v358_v31 = vmax.f32 %v47_v23, %v52_v24  ;;  %v585_v33 = vld [vmem:[#allocation2 + $0xb8] sm:$0xff]  ;;  %v56_v38 = vld [vmem:[#allocation2 + $0x70] sm:$0xff]  ;;  %v601_v49 = vld [vmem:[#allocation2 + $0xc8] sm:$0xff]  ;;  %p517_p12 = pnand %p516_p11, %p510_p8 }
  0x1b   :  { %v572_v22 = vmax.f32 %v38_v14, %v41_v12  ;;  %v580_v29 = vmax.f32 %v39_v18, %v42_v13  ;;  %v230_v34 = vmax.f32 %v226_v26, %v582_v30  ;;  %v231_v35 = vmax.f32 %v227_v27, %v574_v25  ;;  %v591_v39 = vld [vmem:[#allocation2 + $0xb0] sm:$0xff]  ;;  %v57_v41 = vld [vmem:[#allocation2 + $0x78] sm:$0xff]  ;;  %v609_v54 = vld [vmem:[#allocation2 + $0xc0] sm:$0xff] }
  0x1c   :  { %v594_v43 = vmax.f32 %v357_v28, %v56_v38  ;;  %v605_v52 = vmax.f32 %v358_v31, %v57_v41  ;;  %v628_v7 = vld [vmem:[#allocation2 + $0xd8] sm:$0xff]  ;;  %v634_v12 = vld [vmem:[#allocation2 + $0xd0] sm:$0xff]  ;;  %v639_v18 = vld [vmem:[#allocation2 + $0xe8] sm:$0xff] }
  0x1d   :  { %v48_v32 = vmax.f32 %v572_v22, %v46_v15  ;;  %v317_v36 = vrot.slane %v572_v22, 1  ;;  %v49_v37 = vmax.f32 %v580_v29, %v47_v23  ;;  %v234_v42 = vmax.f32 %v230_v34, %v591_v39  ;;  %v645_v28 = vld [vmem:[#allocation2 + $0xe0] sm:$0xff] }
  0x1e   :  { %v235_v45 = vmax.f32 %v231_v35, %v585_v33  ;;  %v320_v47 = vrot.slane %v572_v22, 2  ;;  %v323_v50 = vrot.slane %v572_v22, 3  ;;  %v326_v51 = vrot.slane %v572_v22, 4 }
  0x1f   :  { %v53_v40 = vmax.f32 %v48_v32, %v51_v16  ;;  %v54_v44 = vmax.f32 %v49_v37, %v52_v24  ;;  %v319_v46 = vmax.f32 %v572_v22, %v317_v36  ;;  %v332_v55 = vrot.slane %v580_v29, 3 }
  0x20   :  { %v335_v56 = vrot.slane %v580_v29, 4  ;;  %v338_v57 = vrot.slane %v580_v29, 5  ;;  %v238_v61 = vmax.f32 %v234_v42, %v609_v54  ;;  %v239_v63 = vmax.f32 %v235_v45, %v601_v49  ;;  %v655_v42 = vld [vmem:[#allocation2 + $0xf8] sm:$0xff] }
  0x21   :  { %v599_v48 = vmax.f32 %v53_v40, %v56_v38  ;;  %v607_v53 = vmax.f32 %v54_v44, %v57_v41  ;;  %v322_v0 = vmax.f32 %v319_v46, %v320_v47  ;;  %v343_v1 = vrot.slane %v580_v29, 1  ;;  %v653_v41 = vld [vmem:[#allocation2 + $0xf0] sm:$0xff] }
  0x22   :  { %v346_v10 = vrot.slane %v580_v29, 2  ;;  %v242_v26 = vmax.f32 %v238_v61, %v634_v12  ;;  %v243_v34 = vmax.f32 %v239_v63, %v628_v7 }
  0x23   :  { %v63_v58 = vmax.f32 %v599_v48, %v564_v17  ;;  %v177_v59 = vrot.slane %v599_v48, 1  ;;  %v180_v60 = vrot.slane %v599_v48, 2  ;;  %v64_v62 = vmax.f32 %v607_v53, %v566_v19 }
  0x24   :  { %v183_v4 = vrot.slane %v599_v48, 3  ;;  %v200_v5 = vrot.slane %v607_v53, 1  ;;  %v186_v8 = vrot.slane %v599_v48, 4  ;;  %v203_v9 = vrot.slane %v607_v53, 2 }
  0x25   :  { %v68_v2 = vmax.f32 %v63_v58, %v568_v20  ;;  %v179_v3 = vmax.f32 %v599_v48, %v177_v59  ;;  %v69_v6 = vmax.f32 %v64_v62, %v570_v21  ;;  %v206_v15 = vrot.slane %v607_v53, 3 }
  0x26   :  { %v202_v14 = vmax.f32 %v607_v53, %v200_v5  ;;  %v189_v23 = vrot.slane %v599_v48, 5  ;;  %v209_v24 = vrot.slane %v607_v53, 4  ;;  %v192_v36 = vrot.slane %v599_v48, 6 }
  0x27   :  { %v73_v11 = vmax.f32 %v68_v2, %v582_v30  ;;  %v182_v13 = vmax.f32 %v179_v3, %v180_v60  ;;  %v74_v16 = vmax.f32 %v69_v6, %v574_v25  ;;  %v212_v37 = vrot.slane %v607_v53, 5 }
  0x28   :  { %v205_v32 = vmax.f32 %v202_v14, %v203_v9  ;;  %v246_v38 = vmax.f32 %v242_v26, %v645_v28  ;;  %v247_v46 = vmax.f32 %v243_v34, %v639_v18  ;;  %v195_v58 = vrot.slane %v599_v48, 7 }
  0x29   :  { %v78_v27 = vmax.f32 %v73_v11, %v591_v39  ;;  %v185_v31 = vmax.f32 %v182_v13, %v183_v4  ;;  %v79_v35 = vmax.f32 %v74_v16, %v585_v33  ;;  %v325_v60 = vmax.f32 %v322_v0, %v323_v50 }
  0x2a   :  { %v208_v45 = vmax.f32 %v205_v32, %v206_v15  ;;  %v661_v59 = vmax.f32 %v246_v38, %v653_v41  ;;  %v334_v2 = vmax.f32 %v322_v0, %v332_v55  ;;  %v215_v4 = vrot.slane %v607_v53, 6 }
  0x2b   :  { %v83_v40 = vmax.f32 %v78_v27, %v609_v54  ;;  %v188_v44 = vmax.f32 %v185_v31, %v186_v8  ;;  %v84_v47 = vmax.f32 %v79_v35, %v601_v49  ;;  %v670_v6 = vmax.f32 %v247_v46, %v655_v42 }
  0x2c   :  { %v211_v63 = vmax.f32 %v208_v45, %v209_v24  ;;  %v253_v5 = vrot.slane %v661_v59, 1  ;;  %v256_v9 = vrot.slane %v661_v59, 2  ;;  %v218_v13 = vrot.slane %v607_v53, 7 }
  0x2d   :  { %v88_v61 = vmax.f32 %v83_v40, %v634_v12  ;;  %v191_v62 = vmax.f32 %v188_v44, %v189_v23  ;;  %v89_v3 = vmax.f32 %v84_v47, %v628_v7  ;;  %v365_v14 = vmax.f32 %v594_v43, %v564_v17 }
  0x2e   :  { %v214_v50 = vmax.f32 %v211_v63, %v212_v37  ;;  %v255_v0 = vmax.f32 %v661_v59, %v253_v5  ;;  %v328_v23 = vmax.f32 %v325_v60, %v326_v51  ;;  %v337_v24 = vmax.f32 %v334_v2, %v335_v56 }
  0x2f   :  { %v93_v48 = vmax.f32 %v88_v61, %v645_v28  ;;  %v194_v8 = vmax.f32 %v191_v62, %v192_v36  ;;  %v94_v11 = vmax.f32 %v89_v3, %v639_v18  ;;  %v259_v53 = vrot.slane %v661_v59, 3 }
  0x30   :  { %v217_v27 = vmax.f32 %v214_v50, %v215_v4  ;;  %v262_v31 = vrot.slane %v661_v59, 4  ;;  %v258_v32 = vmax.f32 %v255_v0, %v256_v9  ;;  %v276_v22 = vrot.slane %v670_v6, 1 }
  0x31   :  { %v680_v15 = vmax.f32 %v93_v48, %v653_v41  ;;  %v197_v16 = vmax.f32 %v194_v8, %v195_v58  ;;  %v687_v26 = vmax.f32 %v94_v11, %v655_v42  ;;  %v265_v51 = vrot.slane %v661_v59, 5 }
  0x32   :  { %v268_v34 = vrot.slane %v661_v59, 6  ;;  %v271_v35 = vrot.slane %v661_v59, 7  ;;  %v279_v36 = vrot.slane %v670_v6, 2  ;;  %v220_v58 = vmax.f32 %v217_v27, %v218_v13 }
  0x33   :  { %v101_v17 = vrot.slane %v680_v15, 1  ;;  %v104_v43 = vrot.slane %v680_v15, 2  ;;  %198 = vst [vmem:[#allocation5 + $0x1] sm:$0x1] %v197_v16  ;;  %v107_v38 = vrot.slane %v680_v15, 3  ;;  %v110_v40 = vrot.slane %v680_v15, 4 }
  0x34   :  { %v113_v44 = vrot.slane %v680_v15, 5  ;;  %v116_v45 = vrot.slane %v680_v15, 6  ;;  %v119_v46 = vrot.slane %v680_v15, 7  ;;  %v124_v47 = vrot.slane %v687_v26, 1  ;;  %221 = vst [vmem:[#allocation5 + $0x2] sm:$0x1] %v220_v58 }
  0x35   :  { %v103_v37 = vmax.f32 %v680_v15, %v101_v17  ;;  %v261_v61 = vmax.f32 %v258_v32, %v259_v53  ;;  %v278_v59 = vmax.f32 %v670_v6, %v276_v22  ;;  %v282_v62 = vrot.slane %v670_v6, 3 }
  0x36   :  { %v127_v63 = vrot.slane %v687_v26, 2  ;;  %v285_v2 = vrot.slane %v670_v6, 4  ;;  %v288_v3 = vrot.slane %v670_v6, 5  ;;  %v291_v4 = vrot.slane %v670_v6, 6 }
  0x37   :  { %v106_v60 = vmax.f32 %v103_v37, %v104_v43  ;;  %v264_v48 = vmax.f32 %v261_v61, %v262_v31  ;;  %v281_v8 = vmax.f32 %v278_v59, %v279_v36  ;;  %v329_v50 = vmax.f32 %v328_v23, 0.0 }
  0x38   :  { %v340_v9 = vmax.f32 %v337_v24, %v338_v57  ;;  %v345_v11 = vmax.f32 %v580_v29, %v343_v1  ;;  %v369_v13 = vmax.f32 %v365_v14, %v568_v20  ;;  %v366_v0 = vmax.f32 %v605_v52, %v566_v19 }
  0x39   :  { %v109_v5 = vmax.f32 %v106_v60, %v107_v38  ;;  %v267_v16 = vmax.f32 %v264_v48, %v265_v51  ;;  %v284_v27 = vmax.f32 %v281_v8, %v282_v62  ;;  %330 = vst [vmem:[#allocation5 + $0x5] sm:$0x1] %v329_v50  ;;  %v415_v53 = vmax.f32 %v591_v39, %v609_v54 }
  0x3a   :  { %v341_v23 = vmax.f32 %v340_v9, 0.0  ;;  %v348_v57 = vmax.f32 %v345_v11, %v346_v10  ;;  %v373_v24 = vmax.f32 %v369_v13, %v582_v30  ;;  %v370_v1 = vmax.f32 %v366_v0, %v570_v21 }
  0x3b   :  { %v112_v15 = vmax.f32 %v109_v5, %v110_v40  ;;  %v270_v20 = vmax.f32 %v267_v16, %v268_v34  ;;  %v287_v14 = vmax.f32 %v284_v27, %v285_v2  ;;  %v419_v19 = vmax.f32 %v415_v53, %v634_v12 }
  0x3c   :  { %v294_v52 = vrot.slane %v670_v6, 7  ;;  %342 = vst [vmem:[#allocation5 + $0x1] sm:$0x20] %v341_v23  ;;  %v349_v17 = vmax.f32 %v348_v57, %v332_v55  ;;  %v376_v39 = vrot.slane %v373_v24, 1  ;;  %v379_v54 = vrot.slane %v373_v24, 2 }
  0x3d   :  { %v115_v31 = vmax.f32 %v112_v15, %v113_v44  ;;  %v273_v32 = vmax.f32 %v270_v20, %v271_v35  ;;  %v290_v10 = vmax.f32 %v287_v14, %v288_v3  ;;  %v382_v22 = vrot.slane %v373_v24, 3 }
  0x3e   :  { %v350_v21 = vmax.f32 %v349_v17, %v335_v56  ;;  %v378_v30 = vmax.f32 %v373_v24, %v376_v39  ;;  %v374_v51 = vmax.f32 %v370_v1, %v574_v25  ;;  %v423_v12 = vmax.f32 %v419_v19, %v645_v28 }
  0x3f   :  { %v118_v43 = vmax.f32 %v115_v31, %v116_v45  ;;  %274 = vst [vmem:[#allocation5 + $0x3] sm:$0x1] %v273_v32  ;;  %v293_v6 = vmax.f32 %v290_v10, %v291_v4  ;;  %v385_v36 = vrot.slane %v373_v24, 4  ;;  %v416_v55 = vmax.f32 %v585_v33, %v601_v49 }
  0x40   :  { %v351_v37 = vmax.f32 %v350_v21, 0.0  ;;  %v381_v38 = vmax.f32 %v378_v30, %v379_v54  ;;  %v391_v35 = vrot.slane %v374_v51, 3  ;;  %v394_v40 = vrot.slane %v374_v51, 4 }
  0x41   :  { %v121_v34 = vmax.f32 %v118_v43, %v119_v46  ;;  %v296_v29 = vmax.f32 %v293_v6, %v294_v52  ;;  %v397_v56 = vrot.slane %v374_v51, 5  ;;  %v401_v45 = vrot.slane %v374_v51, 1 }
  0x42   :  { %352 = vst [vmem:[#allocation5 + $0x4] sm:$0x8] %v351_v37  ;;  %v384_v25 = vmax.f32 %v381_v38, %v382_v22  ;;  %v393_v58 = vmax.f32 %v381_v38, %v391_v35  ;;  %v404_v28 = vrot.slane %v374_v51, 2  ;;  %v427_v46 = vmax.f32 %v423_v12, %v653_v41 }
  0x43   :  { %v122_v44 = vmax.f32 %v121_v34, %v687_v26  ;;  %v130_v33 = vrot.slane %v687_v26, 3  ;;  %297 = vst [vmem:[#allocation5 + $0x4] sm:$0x1] %v296_v29  ;;  %v403_v49 = vmax.f32 %v374_v51, %v401_v45  ;;  %v420_v61 = vmax.f32 %v416_v55, %v628_v7 }
  0x44   :  { %v387_v59 = vmax.f32 %v384_v25, %v385_v36  ;;  %v396_v62 = vmax.f32 %v393_v58, %v394_v40  ;;  %v430_v2 = vrot.slane %v427_v46, 1  ;;  %v433_v3 = vrot.slane %v427_v46, 2 }
  0x45   :  { %v126_v60 = vmax.f32 %v122_v44, %v124_v47  ;;  %v133_v5 = vrot.slane %v687_v26, 4  ;;  %v406_v48 = vmax.f32 %v403_v49, %v404_v28  ;;  %v436_v41 = vrot.slane %v427_v46, 3 }
  0x46   :  { %v388_v8 = vmax.f32 %v387_v59, 0.0  ;;  %v399_v50 = vmax.f32 %v396_v62, %v397_v56  ;;  %v432_v47 = vmax.f32 %v427_v46, %v430_v2  ;;  %v424_v9 = vmax.f32 %v420_v61, %v639_v18 }
  0x47   :  { %v129_v4 = vmax.f32 %v126_v60, %v127_v63  ;;  %v136_v13 = vrot.slane %v687_v26, 5  ;;  %v407_v7 = vmax.f32 %v406_v48, %v391_v35  ;;  %v439_v15 = vrot.slane %v427_v46, 4 }
  0x48   :  { %389 = vst [vmem:[#allocation5 + $0x8] sm:$0x1] %v388_v8  ;;  %400 = vst [vmem:[#allocation5 + $0x4] sm:$0x20] %v399_v50  ;;  %v435_v0 = vmax.f32 %v432_v47, %v433_v3  ;;  %v428_v16 = vmax.f32 %v424_v9, %v655_v42  ;;  %v139_v27 = vrot.slane %v687_v26, 6  ;;  %v142_v23 = vrot.slane %v687_v26, 7 }
  0x49   :  { %v132_v11 = vmax.f32 %v129_v4, %v130_v33  ;;  %v408_v53 = vmax.f32 %v407_v7, %v394_v40 }
  0x4a   :  { %v438_v57 = vmax.f32 %v435_v0, %v436_v41  ;;  %v445_v24 = vrot.slane %v428_v16, 3  ;;  %v448_v1 = vrot.slane %v428_v16, 4  ;;  %v456_v20 = vrot.slane %v428_v16, 1 }
  0x4b   :  { %v135_v63 = vmax.f32 %v132_v11, %v133_v5  ;;  %v409_v31 = vmax.f32 %v408_v53, 0.0  ;;  %v459_v14 = vrot.slane %v428_v16, 2  ;;  %v451_v17 = vrot.slane %v428_v16, 5 }
  0x4c   :  { %v441_v19 = vmax.f32 %v438_v57, %v439_v15  ;;  %v447_v52 = vmax.f32 %v435_v0, %v445_v24  ;;  %v458_v54 = vmax.f32 %v428_v16, %v456_v20 }
  0x4d   :  { %v138_v18 = vmax.f32 %v135_v63, %v136_v13  ;;  %410 = vst [vmem:[#allocation5 + $0x7] sm:$0x8] %v409_v31 }
  0x4e   :  { %v442_v42 = vmax.f32 %v441_v19, 0.0  ;;  %v450_v43 = vmax.f32 %v447_v52, %v448_v1  ;;  %v461_v10 = vmax.f32 %v458_v54, %v459_v14 }
  0x4f   :  { %v141_v39 = vmax.f32 %v138_v18, %v139_v27 }
  0x50   :  { %443 = vst [vmem:[#allocation5 + $0xb] sm:$0x1] %v442_v42  ;;  %v453_v22 = vmax.f32 %v450_v43, %v451_v17  ;;  %v462_v26 = vmax.f32 %v461_v10, %v445_v24 }
  0x51   :  { %v144_v32 = vmax.f32 %v141_v39, %v142_v23 }
  0x52   :  { %v454_v21 = vmax.f32 %v453_v22, 0.0  ;;  %v463_v30 = vmax.f32 %v462_v26, %v448_v1 }
  0x53   :  { %145 = vst [vmem:[#allocation5] sm:$0x1] %v144_v32 }
  0x54   :  { %455 = vst [vmem:[#allocation5 + $0x7] sm:$0x20] %v454_v21  ;;  %v464_v51 = vmax.f32 %v463_v30, 0.0 }
  0x56   :  { %465 = vst [vmem:[#allocation5 + $0xa] sm:$0x8] %v464_v51 }
  0x57   :  { %520 = shalt.err (!%p517_p12)
}
  0x58   :  { %s521_s24 = scalar_lea.hbm %s765_s1, 256 }
  0x59   :  { %p522_p13 = scmp.ne.s32.totalorder %s765_s1, %s521_s24  ;;  %p525_p0 = scmp.lt.u32.totalorder %s521_s24, %s765_s1 }
  0x5b   :  { %p527_p1 = pnand %p525_p0, %p522_p13 }
  0x5d   :  { %530 = shalt.err (!%p527_p1)
}
  0x5e   :  { %477 = dma.vmem_to_hbm [thread:$0]  %s472_s20, 256, %s765_s1, [#allocation4], %s536_s16, %s536_s16, %s537_s17  }
  0x5f   :  { %533 = dma.done.wait [#allocation4], 256  }
  0x60   :  { %534 = vsyncadd [#allocation4], 4294967040 }
  0x61   :  { %481 = vsyncpa [#allocation3], 1 }
  0x62   :  { %482 = vsyncpa [#allocation4], 1 }

</bundles_post_ra>
